<compile_context>
chip_gen: v7x
topology: tpu7x:2x2x1
jax: 0.10.0
libtpu: 0.0.40
codegen_flags: <defaults>
</compile_context>

<pallas_src>
import functools

import jax
import jax.numpy as jnp
from jax.experimental import pallas as pl
from jax.experimental.pallas import tpu as pltpu


def _round_up(x, m):
    return ((x + m - 1) // m) * m


def _cdiv(a, b):
    return (a + b - 1) // b


# --------------------------------- Wrapper --------------------------------- #
@functools.partial(jax.jit, static_argnames=("stride",))
def conv3d_on_2d(x, weight, bias, stride=(1, 2, 2)):
    """x: (B, C, H, W) f32; weight: (F, 1, kd, kh, kw) f32; bias: (F,) f32."""
    B, C, H, W = x.shape
    F, Ci, kd, kh, kw = weight.shape
    assert Ci == 1
    assert stride == (1, 2, 2), "Conv3Don2D uses Conv3d stride=(1, 2, 2)"

    Do = C - kd + 1
    Ho = (H - kh) // 2 + 1
    Wo = (W - kw) // 2 + 1
    K = kd * kh * kw

    # ---- one cheap relayout pass: stride-2 deinterleave of H/W + flatten ---#
    Hp, Wp = _round_up(H, 2), _round_up(W, 2)
    if (Hp, Wp) != (H, W):
        x = jnp.pad(x, ((0, 0), (0, 0), (0, Hp - H), (0, Wp - W)))
    Hh, Wh = Hp // 2, Wp // 2
    L = C * Hh * Wh
    # xq[b, qh*2+qw, c*Hh*Wh + hh*Wh + wh] = x[b, c, 2*hh+qh, 2*wh+qw]
    xq = (x.reshape(B, C, Hh, 2, Wh, 2)
           .transpose(0, 3, 5, 1, 2, 4)
           .reshape(B, 4, L))

    # Flat output index m = d*Hh*Wh + ho*Wh + wo (over the padded Hh x Wh
    # grid; ho>=Ho / wo>=Wo columns are garbage, sliced off in the epilogue).
    # Tap (dz,dy,dx) reads parity plane q=(dy%2)*2+(dx%2) at m + off, with a
    # static offset off = dz*Hh*Wh + (dy//2)*Wh + (dx//2).
    Mv = Do * Hh * Wh
    off_max = (kd - 1) * Hh * Wh + ((kh - 1) // 2) * Wh + (kw - 1) // 2

    # ---- tile / grid selection ---------------------------------------------#
    TM_CAP = 2048                                  # >512 per review; well under VMEM
    tm = min(TM_CAP, _round_up(Mv, 128))
    while tm > 128 and B * _cdiv(Mv, tm) < 4:      # >=4 parallel steps (v7x TCs)
        tm -= 128
    n_m = _cdiv(Mv, tm)
    Mp = n_m * tm
    winl = _round_up(tm + off_max, 128)            # per-tile window incl. halo
    Lp = (n_m - 1) * tm + winl
    xq = jnp.pad(xq, ((0, 0), (0, 0), (0, Lp - L)))
    # Overlapping per-tile windows (halo = off_max lanes) so all in-kernel
    # slicing is static; XLA fuses this with the relayout above (~1-2x |x|).
    xwin = jnp.stack([xq[:, :, i * tm:i * tm + winl] for i in range(n_m)],
                     axis=1)                       # (B, n_m, 4, winl) f32

    Kp = _round_up(K, 8)
    w_p = jnp.pad(weight.reshape(F, K).astype(jnp.float32),
                  ((0, 0), (0, Kp - K)))           # (F, Kp), zero-padded taps
    b_col = bias.astype(jnp.float32).reshape(F, 1)

    taps = []
    for dz in range(kd):
        for dy in range(kh):
            for dx in range(kw):
                taps.append(((dy % 2) * 2 + (dx % 2),
                             dz * Hh * Wh + (dy // 2) * Wh + dx // 2))

    # ------------------------------ Pallas kernel ---------------------------#
    def _kernel(x_ref, w_ref, b_ref, o_ref, patch_ref):
        # x_ref:  (1, 1, 4, winl) f32  window (4 stride-2 parity planes)
        # w_ref:  (F, Kp) f32 resident weights;  b_ref: (F, 1) f32 bias column
        # o_ref:  (1, F, tm) f32 lane-dense output tile
        # patch_ref: (Kp, tm) f32 VMEM scratch -- im2col tile built in-kernel
        for k, (q, off) in enumerate(taps):
            patch_ref[k, :] = x_ref[0, 0, q, pl.ds(off, tm)]
        for k in range(K, Kp):                     # keep padded K rows finite
            patch_ref[k, :] = jnp.zeros((tm,), jnp.float32)
        acc = jnp.dot(w_ref[...], patch_ref[...],
                      preferred_element_type=jnp.float32)
        o_ref[0] = acc + b_ref[...]

    out_p = pl.pallas_call(
        _kernel,
        out_shape=jax.ShapeDtypeStruct((B, F, Mp), jnp.float32),
        grid=(B, n_m),
        in_specs=[
            pl.BlockSpec((1, 1, 4, winl), lambda b, i: (b, i, 0, 0)),
            pl.BlockSpec((F, Kp), lambda b, i: (0, 0)),   # weights resident
            pl.BlockSpec((F, 1), lambda b, i: (0, 0)),    # bias resident
        ],
        out_specs=pl.BlockSpec((1, F, tm), lambda b, i: (b, 0, i)),
        scratch_shapes=[pltpu.VMEM((Kp, tm), jnp.float32)],
        compiler_params=pltpu.CompilerParams(
            dimension_semantics=("parallel", "parallel")),
    )(xwin, w_p, b_col)

    # Epilogue: slice off garbage columns + pure reshapes (no transpose).
    out = out_p[:, :, :Mv].reshape(B, F, Do, Hh, Wh)[:, :, :, :Ho, :Wo]
    return out.reshape(B, F * Do, Ho, Wo)


# ------------------------------- Reference --------------------------------- #
def _reference(x, weight, bias, stride=(1, 2, 2)):
    B, C, H, W = x.shape
    F = weight.shape[0]
    x5 = x.reshape(B, 1, C, H, W)
    y5 = jax.lax.conv_general_dilated(
        x5, weight, window_strides=stride, padding="VALID",
        dimension_numbers=("NCDHW", "OIDHW", "NCDHW"),
        precision=jax.lax.Precision.HIGHEST)
    y5 = y5 + bias.reshape(1, F, 1, 1, 1)
    B_, F_, Do, Ho, Wo = y5.shape
    return y5.reshape(B_, F_ * Do, Ho, Wo)


if __name__ == "__main__":
    # Module config: in_channels=4, num_filters=8, kernel_size=(2,3,3),
    # normalization=None (=> Conv3d has bias, norm layer is Identity).
    in_channels, num_filters = 4, 8
    kd, kh, kw = 2, 3, 3
    B, H, W = 2, 16, 16

    key = jax.random.PRNGKey(0)
    kx, kw_key = jax.random.split(key)

    x = jax.random.normal(kx, (B, in_channels, H, W), dtype=jnp.float32)

    # Deterministic kaiming_normal_ equivalent: std=sqrt(2/fan_in), fan_in=kd*kh*kw
    fan_in = 1 * kd * kh * kw
    std = (2.0 / fan_in) ** 0.5
    weight = std * jax.random.normal(
        kw_key, (num_filters, 1, kd, kh, kw), dtype=jnp.float32)
    bias = jnp.zeros((num_filters,), jnp.float32)  # nn.init.constant_(bias, 0)

    y = jax.block_until_ready(conv3d_on_2d(x, weight, bias))

    # shape check
    Do = in_channels - kd + 1
    Ho = (H - kh) // 2 + 1
    Wo = (W - kw) // 2 + 1
    assert y.shape == (B, num_filters * Do, Ho, Wo), y.shape

    # Numerics vs. full-precision f32 reference.  Operands/accumulation/output
    # are all f32, so the expected deviation is ~1e-5; the bound below is kept
    # conservative only to stay robust to MXU f32 multi-pass rounding details
    # across TPU generations.
    y_ref = _reference(x, weight, bias)
    err = float(jnp.max(jnp.abs(y - y_ref)))
    assert jnp.allclose(y, y_ref, atol=2e-2, rtol=1e-2), err

    print("KERNEL_OK")
</pallas_src>

<mosaic_0001>
module attributes {stable_mosaic.version = 11 : i64} {
  func.func @_kernel(%arg0: i32, %arg1: i32, %arg2: memref<1x1x4x256xf32, #tpu.memory_space<vmem>>, %arg3: memref<8x24xf32, #tpu.memory_space<vmem>>, %arg4: memref<8x1xf32, #tpu.memory_space<vmem>>, %arg5: memref<1x8x128xf32, #tpu.memory_space<vmem>>, %arg6: memref<24x128xf32, #tpu.memory_space<vmem>>) attributes {dimension_semantics = [#tpu.dimension_semantics<parallel>, #tpu.dimension_semantics<parallel>], iteration_bounds = array<i64: 2, 2>, scalar_prefetch = 0 : i64, scratch_operands = 1 : i64, tpu.core_type = #tpu.core_type<tc>, window_params = [{transform_indices = @transform_0, window_bounds = array<i64: 1, 1, 4, 256>}, {pipeline_mode = #tpu.pipeline_mode<synchronous>, transform_indices = @transform_1, window_bounds = array<i64: 8, 24>}, {pipeline_mode = #tpu.pipeline_mode<synchronous>, transform_indices = @transform_2, window_bounds = array<i64: 8, 1>}, {transform_indices = @transform_3, window_bounds = array<i64: 1, 8, 128>}]} {
    %c0 = arith.constant 0 : index
    %c0_0 = arith.constant 0 : index
    %c0_1 = arith.constant 0 : index
    %c0_2 = arith.constant 0 : index
    %0 = vector.load %arg2[%c0, %c0_0, %c0_1, %c0_2] : memref<1x1x4x256xf32, #tpu.memory_space<vmem>>, vector<1x1x1x128xf32>
    %1 = vector.shape_cast %0 : vector<1x1x1x128xf32> to vector<128xf32>
    %c0_3 = arith.constant 0 : index
    %c0_4 = arith.constant 0 : index
    %2 = vector.load %arg6[%c0_3, %c0_4] : memref<24x128xf32, #tpu.memory_space<vmem>>, vector<1x128xf32>
    %3 = vector.shape_cast %2 : vector<1x128xf32> to vector<128xf32>
    %4 = vector.shape_cast %1 : vector<128xf32> to vector<1x128xf32>
    tpu.vector_store %arg6[%c0_3, %c0_4], %4 {strides = array<i32>} : memref<24x128xf32, #tpu.memory_space<vmem>>, vector<1x128xf32>,
    %c0_5 = arith.constant 0 : index
    %c0_6 = arith.constant 0 : index
    %c1 = arith.constant 1 : index
    %c0_7 = arith.constant 0 : index
    %5 = vector.load %arg2[%c0_5, %c0_6, %c1, %c0_7] : memref<1x1x4x256xf32, #tpu.memory_space<vmem>>, vector<1x1x1x128xf32>
    %6 = vector.shape_cast %5 : vector<1x1x1x128xf32> to vector<128xf32>
    %c1_8 = arith.constant 1 : index
    %c0_9 = arith.constant 0 : index
    %7 = vector.load %arg6[%c1_8, %c0_9] : memref<24x128xf32, #tpu.memory_space<vmem>>, vector<1x128xf32>
    %8 = vector.shape_cast %7 : vector<1x128xf32> to vector<128xf32>
    %9 = vector.shape_cast %6 : vector<128xf32> to vector<1x128xf32>
    tpu.vector_store %arg6[%c1_8, %c0_9], %9 {strides = array<i32>} : memref<24x128xf32, #tpu.memory_space<vmem>>, vector<1x128xf32>,
    %c0_10 = arith.constant 0 : index
    %c0_11 = arith.constant 0 : index
    %c0_12 = arith.constant 0 : index
    %c1_13 = arith.constant 1 : index
    %10 = vector.load %arg2[%c0_10, %c0_11, %c0_12, %c1_13] : memref<1x1x4x256xf32, #tpu.memory_space<vmem>>, vector<1x1x1x128xf32>
    %11 = vector.shape_cast %10 : vector<1x1x1x128xf32> to vector<128xf32>
    %c2 = arith.constant 2 : index
    %c0_14 = arith.constant 0 : index
    %12 = vector.load %arg6[%c2, %c0_14] : memref<24x128xf32, #tpu.memory_space<vmem>>, vector<1x128xf32>
    %13 = vector.shape_cast %12 : vector<1x128xf32> to vector<128xf32>
    %14 = vector.shape_cast %11 : vector<128xf32> to vector<1x128xf32>
    tpu.vector_store %arg6[%c2, %c0_14], %14 {strides = array<i32>} : memref<24x128xf32, #tpu.memory_space<vmem>>, vector<1x128xf32>,
    %c0_15 = arith.constant 0 : index
    %c0_16 = arith.constant 0 : index
    %c2_17 = arith.constant 2 : index
    %c0_18 = arith.constant 0 : index
    %15 = vector.load %arg2[%c0_15, %c0_16, %c2_17, %c0_18] : memref<1x1x4x256xf32, #tpu.memory_space<vmem>>, vector<1x1x1x128xf32>
    %16 = vector.shape_cast %15 : vector<1x1x1x128xf32> to vector<128xf32>
    %c3 = arith.constant 3 : index
    %c0_19 = arith.constant 0 : index
    %17 = vector.load %arg6[%c3, %c0_19] : memref<24x128xf32, #tpu.memory_space<vmem>>, vector<1x128xf32>
    %18 = vector.shape_cast %17 : vector<1x128xf32> to vector<128xf32>
    %19 = vector.shape_cast %16 : vector<128xf32> to vector<1x128xf32>
    tpu.vector_store %arg6[%c3, %c0_19], %19 {strides = array<i32>} : memref<24x128xf32, #tpu.memory_space<vmem>>, vector<1x128xf32>,
    %c0_20 = arith.constant 0 : index
    %c0_21 = arith.constant 0 : index
    %c3_22 = arith.constant 3 : index
    %c0_23 = arith.constant 0 : index
    %20 = vector.load %arg2[%c0_20, %c0_21, %c3_22, %c0_23] : memref<1x1x4x256xf32, #tpu.memory_space<vmem>>, vector<1x1x1x128xf32>
    %21 = vector.shape_cast %20 : vector<1x1x1x128xf32> to vector<128xf32>
    %c4 = arith.constant 4 : index
    %c0_24 = arith.constant 0 : index
    %22 = vector.load %arg6[%c4, %c0_24] : memref<24x128xf32, #tpu.memory_space<vmem>>, vector<1x128xf32>
    %23 = vector.shape_cast %22 : vector<1x128xf32> to vector<128xf32>
    %24 = vector.shape_cast %21 : vector<128xf32> to vector<1x128xf32>
    tpu.vector_store %arg6[%c4, %c0_24], %24 {strides = array<i32>} : memref<24x128xf32, #tpu.memory_space<vmem>>, vector<1x128xf32>,
    %c0_25 = arith.constant 0 : index
    %c0_26 = arith.constant 0 : index
    %c2_27 = arith.constant 2 : index
    %c1_28 = arith.constant 1 : index
    %25 = vector.load %arg2[%c0_25, %c0_26, %c2_27, %c1_28] : memref<1x1x4x256xf32, #tpu.memory_space<vmem>>, vector<1x1x1x128xf32>
    %26 = vector.shape_cast %25 : vector<1x1x1x128xf32> to vector<128xf32>
    %c5 = arith.constant 5 : index
    %c0_29 = arith.constant 0 : index
    %27 = vector.load %arg6[%c5, %c0_29] : memref<24x128xf32, #tpu.memory_space<vmem>>, vector<1x128xf32>
    %28 = vector.shape_cast %27 : vector<1x128xf32> to vector<128xf32>
    %29 = vector.shape_cast %26 : vector<128xf32> to vector<1x128xf32>
    tpu.vector_store %arg6[%c5, %c0_29], %29 {strides = array<i32>} : memref<24x128xf32, #tpu.memory_space<vmem>>, vector<1x128xf32>,
    %c0_30 = arith.constant 0 : index
    %c0_31 = arith.constant 0 : index
    %c0_32 = arith.constant 0 : index
    %c8 = arith.constant 8 : index
    %30 = vector.load %arg2[%c0_30, %c0_31, %c0_32, %c8] : memref<1x1x4x256xf32, #tpu.memory_space<vmem>>, vector<1x1x1x128xf32>
    %31 = vector.shape_cast %30 : vector<1x1x1x128xf32> to vector<128xf32>
    %c6 = arith.constant 6 : index
    %c0_33 = arith.constant 0 : index
    %32 = vector.load %arg6[%c6, %c0_33] : memref<24x128xf32, #tpu.memory_space<vmem>>, vector<1x128xf32>
    %33 = vector.shape_cast %32 : vector<1x128xf32> to vector<128xf32>
    %34 = vector.shape_cast %31 : vector<128xf32> to vector<1x128xf32>
    tpu.vector_store %arg6[%c6, %c0_33], %34 {strides = array<i32>} : memref<24x128xf32, #tpu.memory_space<vmem>>, vector<1x128xf32>,
    %c0_34 = arith.constant 0 : index
    %c0_35 = arith.constant 0 : index
    %c1_36 = arith.constant 1 : index
    %c8_37 = arith.constant 8 : index
    %35 = vector.load %arg2[%c0_34, %c0_35, %c1_36, %c8_37] : memref<1x1x4x256xf32, #tpu.memory_space<vmem>>, vector<1x1x1x128xf32>
    %36 = vector.shape_cast %35 : vector<1x1x1x128xf32> to vector<128xf32>
    %c7 = arith.constant 7 : index
    %c0_38 = arith.constant 0 : index
    %37 = vector.load %arg6[%c7, %c0_38] : memref<24x128xf32, #tpu.memory_space<vmem>>, vector<1x128xf32>
    %38 = vector.shape_cast %37 : vector<1x128xf32> to vector<128xf32>
    %39 = vector.shape_cast %36 : vector<128xf32> to vector<1x128xf32>
    tpu.vector_store %arg6[%c7, %c0_38], %39 {strides = array<i32>} : memref<24x128xf32, #tpu.memory_space<vmem>>, vector<1x128xf32>,
    %c0_39 = arith.constant 0 : index
    %c0_40 = arith.constant 0 : index
    %c0_41 = arith.constant 0 : index
    %c9 = arith.constant 9 : index
    %40 = vector.load %arg2[%c0_39, %c0_40, %c0_41, %c9] : memref<1x1x4x256xf32, #tpu.memory_space<vmem>>, vector<1x1x1x128xf32>
    %41 = vector.shape_cast %40 : vector<1x1x1x128xf32> to vector<128xf32>
    %c8_42 = arith.constant 8 : index
    %c0_43 = arith.constant 0 : index
    %42 = vector.load %arg6[%c8_42, %c0_43] : memref<24x128xf32, #tpu.memory_space<vmem>>, vector<1x128xf32>
    %43 = vector.shape_cast %42 : vector<1x128xf32> to vector<128xf32>
    %44 = vector.shape_cast %41 : vector<128xf32> to vector<1x128xf32>
    tpu.vector_store %arg6[%c8_42, %c0_43], %44 {strides = array<i32>} : memref<24x128xf32, #tpu.memory_space<vmem>>, vector<1x128xf32>,
    %c0_44 = arith.constant 0 : index
    %c0_45 = arith.constant 0 : index
    %c0_46 = arith.constant 0 : index
    %c64 = arith.constant 64 : index
    %45 = vector.load %arg2[%c0_44, %c0_45, %c0_46, %c64] : memref<1x1x4x256xf32, #tpu.memory_space<vmem>>, vector<1x1x1x128xf32>
    %46 = vector.shape_cast %45 : vector<1x1x1x128xf32> to vector<128xf32>
    %c9_47 = arith.constant 9 : index
    %c0_48 = arith.constant 0 : index
    %47 = vector.load %arg6[%c9_47, %c0_48] : memref<24x128xf32, #tpu.memory_space<vmem>>, vector<1x128xf32>
    %48 = vector.shape_cast %47 : vector<1x128xf32> to vector<128xf32>
    %49 = vector.shape_cast %46 : vector<128xf32> to vector<1x128xf32>
    tpu.vector_store %arg6[%c9_47, %c0_48], %49 {strides = array<i32>} : memref<24x128xf32, #tpu.memory_space<vmem>>, vector<1x128xf32>,
    %c0_49 = arith.constant 0 : index
    %c0_50 = arith.constant 0 : index
    %c1_51 = arith.constant 1 : index
    %c64_52 = arith.constant 64 : index
    %50 = vector.load %arg2[%c0_49, %c0_50, %c1_51, %c64_52] : memref<1x1x4x256xf32, #tpu.memory_space<vmem>>, vector<1x1x1x128xf32>
    %51 = vector.shape_cast %50 : vector<1x1x1x128xf32> to vector<128xf32>
    %c10 = arith.constant 10 : index
    %c0_53 = arith.constant 0 : index
    %52 = vector.load %arg6[%c10, %c0_53] : memref<24x128xf32, #tpu.memory_space<vmem>>, vector<1x128xf32>
    %53 = vector.shape_cast %52 : vector<1x128xf32> to vector<128xf32>
    %54 = vector.shape_cast %51 : vector<128xf32> to vector<1x128xf32>
    tpu.vector_store %arg6[%c10, %c0_53], %54 {strides = array<i32>} : memref<24x128xf32, #tpu.memory_space<vmem>>, vector<1x128xf32>,
    %c0_54 = arith.constant 0 : index
    %c0_55 = arith.constant 0 : index
    %c0_56 = arith.constant 0 : index
    %c65 = arith.constant 65 : index
    %55 = vector.load %arg2[%c0_54, %c0_55, %c0_56, %c65] : memref<1x1x4x256xf32, #tpu.memory_space<vmem>>, vector<1x1x1x128xf32>
    %56 = vector.shape_cast %55 : vector<1x1x1x128xf32> to vector<128xf32>
    %c11 = arith.constant 11 : index
    %c0_57 = arith.constant 0 : index
    %57 = vector.load %arg6[%c11, %c0_57] : memref<24x128xf32, #tpu.memory_space<vmem>>, vector<1x128xf32>
    %58 = vector.shape_cast %57 : vector<1x128xf32> to vector<128xf32>
    %59 = vector.shape_cast %56 : vector<128xf32> to vector<1x128xf32>
    tpu.vector_store %arg6[%c11, %c0_57], %59 {strides = array<i32>} : memref<24x128xf32, #tpu.memory_space<vmem>>, vector<1x128xf32>,
    %c0_58 = arith.constant 0 : index
    %c0_59 = arith.constant 0 : index
    %c2_60 = arith.constant 2 : index
    %c64_61 = arith.constant 64 : index
    %60 = vector.load %arg2[%c0_58, %c0_59, %c2_60, %c64_61] : memref<1x1x4x256xf32, #tpu.memory_space<vmem>>, vector<1x1x1x128xf32>
    %61 = vector.shape_cast %60 : vector<1x1x1x128xf32> to vector<128xf32>
    %c12 = arith.constant 12 : index
    %c0_62 = arith.constant 0 : index
    %62 = vector.load %arg6[%c12, %c0_62] : memref<24x128xf32, #tpu.memory_space<vmem>>, vector<1x128xf32>
    %63 = vector.shape_cast %62 : vector<1x128xf32> to vector<128xf32>
    %64 = vector.shape_cast %61 : vector<128xf32> to vector<1x128xf32>
    tpu.vector_store %arg6[%c12, %c0_62], %64 {strides = array<i32>} : memref<24x128xf32, #tpu.memory_space<vmem>>, vector<1x128xf32>,
    %c0_63 = arith.constant 0 : index
    %c0_64 = arith.constant 0 : index
    %c3_65 = arith.constant 3 : index
    %c64_66 = arith.constant 64 : index
    %65 = vector.load %arg2[%c0_63, %c0_64, %c3_65, %c64_66] : memref<1x1x4x256xf32, #tpu.memory_space<vmem>>, vector<1x1x1x128xf32>
    %66 = vector.shape_cast %65 : vector<1x1x1x128xf32> to vector<128xf32>
    %c13 = arith.constant 13 : index
    %c0_67 = arith.constant 0 : index
    %67 = vector.load %arg6[%c13, %c0_67] : memref<24x128xf32, #tpu.memory_space<vmem>>, vector<1x128xf32>
    %68 = vector.shape_cast %67 : vector<1x128xf32> to vector<128xf32>
    %69 = vector.shape_cast %66 : vector<128xf32> to vector<1x128xf32>
    tpu.vector_store %arg6[%c13, %c0_67], %69 {strides = array<i32>} : memref<24x128xf32, #tpu.memory_space<vmem>>, vector<1x128xf32>,
    %c0_68 = arith.constant 0 : index
    %c0_69 = arith.constant 0 : index
    %c2_70 = arith.constant 2 : index
    %c65_71 = arith.constant 65 : index
    %70 = vector.load %arg2[%c0_68, %c0_69, %c2_70, %c65_71] : memref<1x1x4x256xf32, #tpu.memory_space<vmem>>, vector<1x1x1x128xf32>
    %71 = vector.shape_cast %70 : vector<1x1x1x128xf32> to vector<128xf32>
    %c14 = arith.constant 14 : index
    %c0_72 = arith.constant 0 : index
    %72 = vector.load %arg6[%c14, %c0_72] : memref<24x128xf32, #tpu.memory_space<vmem>>, vector<1x128xf32>
    %73 = vector.shape_cast %72 : vector<1x128xf32> to vector<128xf32>
    %74 = vector.shape_cast %71 : vector<128xf32> to vector<1x128xf32>
    tpu.vector_store %arg6[%c14, %c0_72], %74 {strides = array<i32>} : memref<24x128xf32, #tpu.memory_space<vmem>>, vector<1x128xf32>,
    %c0_73 = arith.constant 0 : index
    %c0_74 = arith.constant 0 : index
    %c0_75 = arith.constant 0 : index
    %c72 = arith.constant 72 : index
    %75 = vector.load %arg2[%c0_73, %c0_74, %c0_75, %c72] : memref<1x1x4x256xf32, #tpu.memory_space<vmem>>, vector<1x1x1x128xf32>
    %76 = vector.shape_cast %75 : vector<1x1x1x128xf32> to vector<128xf32>
    %c15 = arith.constant 15 : index
    %c0_76 = arith.constant 0 : index
    %77 = vector.load %arg6[%c15, %c0_76] : memref<24x128xf32, #tpu.memory_space<vmem>>, vector<1x128xf32>
    %78 = vector.shape_cast %77 : vector<1x128xf32> to vector<128xf32>
    %79 = vector.shape_cast %76 : vector<128xf32> to vector<1x128xf32>
    tpu.vector_store %arg6[%c15, %c0_76], %79 {strides = array<i32>} : memref<24x128xf32, #tpu.memory_space<vmem>>, vector<1x128xf32>,
    %c0_77 = arith.constant 0 : index
    %c0_78 = arith.constant 0 : index
    %c1_79 = arith.constant 1 : index
    %c72_80 = arith.constant 72 : index
    %80 = vector.load %arg2[%c0_77, %c0_78, %c1_79, %c72_80] : memref<1x1x4x256xf32, #tpu.memory_space<vmem>>, vector<1x1x1x128xf32>
    %81 = vector.shape_cast %80 : vector<1x1x1x128xf32> to vector<128xf32>
    %c16 = arith.constant 16 : index
    %c0_81 = arith.constant 0 : index
    %82 = vector.load %arg6[%c16, %c0_81] : memref<24x128xf32, #tpu.memory_space<vmem>>, vector<1x128xf32>
    %83 = vector.shape_cast %82 : vector<1x128xf32> to vector<128xf32>
    %84 = vector.shape_cast %81 : vector<128xf32> to vector<1x128xf32>
    tpu.vector_store %arg6[%c16, %c0_81], %84 {strides = array<i32>} : memref<24x128xf32, #tpu.memory_space<vmem>>, vector<1x128xf32>,
    %c0_82 = arith.constant 0 : index
    %c0_83 = arith.constant 0 : index
    %c0_84 = arith.constant 0 : index
    %c73 = arith.constant 73 : index
    %85 = vector.load %arg2[%c0_82, %c0_83, %c0_84, %c73] : memref<1x1x4x256xf32, #tpu.memory_space<vmem>>, vector<1x1x1x128xf32>
    %86 = vector.shape_cast %85 : vector<1x1x1x128xf32> to vector<128xf32>
    %c17 = arith.constant 17 : index
    %c0_85 = arith.constant 0 : index
    %87 = vector.load %arg6[%c17, %c0_85] : memref<24x128xf32, #tpu.memory_space<vmem>>, vector<1x128xf32>
    %88 = vector.shape_cast %87 : vector<1x128xf32> to vector<128xf32>
    %89 = vector.shape_cast %86 : vector<128xf32> to vector<1x128xf32>
    tpu.vector_store %arg6[%c17, %c0_85], %89 {strides = array<i32>} : memref<24x128xf32, #tpu.memory_space<vmem>>, vector<1x128xf32>,
    %cst = arith.constant 0.000000e+00 : f32
    %90 = vector.broadcast %cst : f32 to vector<128xf32>
    %c18 = arith.constant 18 : index
    %c0_86 = arith.constant 0 : index
    %91 = vector.load %arg6[%c18, %c0_86] : memref<24x128xf32, #tpu.memory_space<vmem>>, vector<1x128xf32>
    %92 = vector.shape_cast %91 : vector<1x128xf32> to vector<128xf32>
    %93 = vector.shape_cast %90 : vector<128xf32> to vector<1x128xf32>
    tpu.vector_store %arg6[%c18, %c0_86], %93 {strides = array<i32>} : memref<24x128xf32, #tpu.memory_space<vmem>>, vector<1x128xf32>,
    %cst_87 = arith.constant 0.000000e+00 : f32
    %94 = vector.broadcast %cst_87 : f32 to vector<128xf32>
    %c19 = arith.constant 19 : index
    %c0_88 = arith.constant 0 : index
    %95 = vector.load %arg6[%c19, %c0_88] : memref<24x128xf32, #tpu.memory_space<vmem>>, vector<1x128xf32>
    %96 = vector.shape_cast %95 : vector<1x128xf32> to vector<128xf32>
    %97 = vector.shape_cast %94 : vector<128xf32> to vector<1x128xf32>
    tpu.vector_store %arg6[%c19, %c0_88], %97 {strides = array<i32>} : memref<24x128xf32, #tpu.memory_space<vmem>>, vector<1x128xf32>,
    %cst_89 = arith.constant 0.000000e+00 : f32
    %98 = vector.broadcast %cst_89 : f32 to vector<128xf32>
    %c20 = arith.constant 20 : index
    %c0_90 = arith.constant 0 : index
    %99 = vector.load %arg6[%c20, %c0_90] : memref<24x128xf32, #tpu.memory_space<vmem>>, vector<1x128xf32>
    %100 = vector.shape_cast %99 : vector<1x128xf32> to vector<128xf32>
    %101 = vector.shape_cast %98 : vector<128xf32> to vector<1x128xf32>
    tpu.vector_store %arg6[%c20, %c0_90], %101 {strides = array<i32>} : memref<24x128xf32, #tpu.memory_space<vmem>>, vector<1x128xf32>,
    %cst_91 = arith.constant 0.000000e+00 : f32
    %102 = vector.broadcast %cst_91 : f32 to vector<128xf32>
    %c21 = arith.constant 21 : index
    %c0_92 = arith.constant 0 : index
    %103 = vector.load %arg6[%c21, %c0_92] : memref<24x128xf32, #tpu.memory_space<vmem>>, vector<1x128xf32>
    %104 = vector.shape_cast %103 : vector<1x128xf32> to vector<128xf32>
    %105 = vector.shape_cast %102 : vector<128xf32> to vector<1x128xf32>
    tpu.vector_store %arg6[%c21, %c0_92], %105 {strides = array<i32>} : memref<24x128xf32, #tpu.memory_space<vmem>>, vector<1x128xf32>,
    %cst_93 = arith.constant 0.000000e+00 : f32
    %106 = vector.broadcast %cst_93 : f32 to vector<128xf32>
    %c22 = arith.constant 22 : index
    %c0_94 = arith.constant 0 : index
    %107 = vector.load %arg6[%c22, %c0_94] : memref<24x128xf32, #tpu.memory_space<vmem>>, vector<1x128xf32>
    %108 = vector.shape_cast %107 : vector<1x128xf32> to vector<128xf32>
    %109 = vector.shape_cast %106 : vector<128xf32> to vector<1x128xf32>
    tpu.vector_store %arg6[%c22, %c0_94], %109 {strides = array<i32>} : memref<24x128xf32, #tpu.memory_space<vmem>>, vector<1x128xf32>,
    %cst_95 = arith.constant 0.000000e+00 : f32
    %110 = vector.broadcast %cst_95 : f32 to vector<128xf32>
    %c23 = arith.constant 23 : index
    %c0_96 = arith.constant 0 : index
    %111 = vector.load %arg6[%c23, %c0_96] : memref<24x128xf32, #tpu.memory_space<vmem>>, vector<1x128xf32>
    %112 = vector.shape_cast %111 : vector<1x128xf32> to vector<128xf32>
    %113 = vector.shape_cast %110 : vector<128xf32> to vector<1x128xf32>
    tpu.vector_store %arg6[%c23, %c0_96], %113 {strides = array<i32>} : memref<24x128xf32, #tpu.memory_space<vmem>>, vector<1x128xf32>,
    %c0_97 = arith.constant 0 : index
    %c0_98 = arith.constant 0 : index
    %114 = vector.load %arg3[%c0_97, %c0_98] : memref<8x24xf32, #tpu.memory_space<vmem>>, vector<8x24xf32>
    %c0_99 = arith.constant 0 : index
    %c0_100 = arith.constant 0 : index
    %115 = vector.load %arg6[%c0_99, %c0_100] : memref<24x128xf32, #tpu.memory_space<vmem>>, vector<24x128xf32>
    %cst_101 = arith.constant dense<0.000000e+00> : vector<8x128xf32>
    %116 = tpu.matmul %114, %115, %cst_101 {dimension_numbers = #tpu.dot_dimension_numbers<[1], [0], [0], [1], [0, 0, 1, 1], [], []>} : vector<8x24xf32>, vector<24x128xf32>, vector<8x128xf32> -> vector<8x128xf32>
    %c0_102 = arith.constant 0 : index
    %c0_103 = arith.constant 0 : index
    %117 = vector.load %arg4[%c0_102, %c0_103] : memref<8x1xf32, #tpu.memory_space<vmem>>, vector<8x1xf32>
    %118 = vector.broadcast %117 : vector<8x1xf32> to vector<8x128xf32>
    %119 = arith.addf %116, %118 : vector<8x128xf32>
    %c0_104 = arith.constant 0 : index
    %c0_105 = arith.constant 0 : index
    %c0_106 = arith.constant 0 : index
    %120 = vector.load %arg5[%c0_104, %c0_105, %c0_106] : memref<1x8x128xf32, #tpu.memory_space<vmem>>, vector<1x8x128xf32>
    %121 = vector.shape_cast %120 : vector<1x8x128xf32> to vector<8x128xf32>
    %122 = vector.shape_cast %119 : vector<8x128xf32> to vector<1x8x128xf32>
    tpu.vector_store %arg5[%c0_104, %c0_105, %c0_106], %122 {strides = array<i32>} : memref<1x8x128xf32, #tpu.memory_space<vmem>>, vector<1x8x128xf32>,
    return
  }
  func.func @transform_0(%arg0: i32, %arg1: i32) -> (i32, i32, i32, i32) {
    %c0_i32 = arith.constant 0 : i32
    %c0_i32_0 = arith.constant 0 : i32
    %c0_i32_1 = arith.constant 0 : i32
    return %arg0, %arg1, %c0_i32, %c0_i32_0 : i32, i32, i32, i32
  }
  func.func @transform_1(%arg0: i32, %arg1: i32) -> (i32, i32) {
    %c0_i32 = arith.constant 0 : i32
    %c0_i32_0 = arith.constant 0 : i32
    %c0_i32_1 = arith.constant 0 : i32
    return %c0_i32, %c0_i32_0 : i32, i32
  }
  func.func @transform_2(%arg0: i32, %arg1: i32) -> (i32, i32) {
    %c0_i32 = arith.constant 0 : i32
    %c0_i32_0 = arith.constant 0 : i32
    %c0_i32_1 = arith.constant 0 : i32
    return %c0_i32, %c0_i32_0 : i32, i32
  }
  func.func @transform_3(%arg0: i32, %arg1: i32) -> (i32, i32, i32) {
    %c0_i32 = arith.constant 0 : i32
    %c0_i32_0 = arith.constant 0 : i32
    return %arg0, %c0_i32, %arg1 : i32, i32, i32
  }
}

</mosaic_0001>

<bundles_post_ra>
// kernel: conv3d_on_2d.1
= control target key start
LH: loop header
LB: loop body
LE: loop exit
PB: predicated region body
PF: predicated region fallthrough
CT: control target
= control target key end

     0   :  { %s790_s12 = smov 0   ;;  %s792_s13 = smov 0   ;;  %s920_s0 = inlined_call_operand.vmem [shape: f32[2,2,4,256], index: 0, kind: input, shape index: {}]   ;;  %s921_s1 = inlined_call_operand.vmem [shape: f32[8,24], index: 1, kind: input, shape index: {}]   ;;  %s922_s2 = inlined_call_operand.vmem [shape: f32[8,1], index: 2, kind: input, shape index: {}]   ;;  %s923_s3 = inlined_call_operand.vmem [shape: f32[2,8,256], index: 3, kind: output, shape index: {}]  }
   0x1   :  { %s794_s14 = smov 0   ;;  %s796_s15 = smov 0  }
   0x2   :  { %s798_s16 = smov 0  }
   0x3 LB: > { %s22_s17 = sadd.s32 1, %s749_s14  ;;  %s25_s18 = sadd.s32 1, %s753_s15  ;;  %s757_s16 = sphi %s798_s16, %s13_s16   ;;  %s753_s15 = sphi %s796_s15, %s927_s15   ;;  %s749_s14 = sphi %s794_s14, %s926_s14   ;;  %s745_s13 = sphi %s792_s13, %s925_s13   ;;  %s741_s12 = sphi %s790_s12, %s924_s12  }
   0x4   : > { %p23_p0 = scmp.ge.s32.totalorder %s22_s17, 2  ;;  %p642_p1 = scmp.ge.s32.totalorder %s757_s16, 1 }
   0x5   : > { %p157_p2 = scmp.lt.s32.totalorder %s757_s16, 5 }
   0x6   : > { %s929_s17 = smov (%p23_p0, %s22_s17), 0  ;;  %s931_s18 = smov (!%p23_p0, %s25_s18), %s753_s15 }
   0x7   : > { %p158_p3 = pnand %p642_p1, %p157_p2  ;;  %p27_p4 = scmp.ge.s32.totalorder %s931_s18, 2 }
   0x8   : > { %p188_p5 = scmp.lt.s32.totalorder (!%p158_p3), %s745_s13, 1  ;;  %p190_p6 = scmp.lt.s32.totalorder (!%p158_p3), %s741_s12, 1  ;;  %v211_v0 = vlaneseq (!%p158_p3)  ;;  %v764_v42 = vmov (!%p158_p3), 0.0   ;;  %v765_v44 = vmov (!%p158_p3), 0.0|0.0   ;;  %vm767_vm0 = vmmov (!%p158_p3), 0   ;;  %v468_v51 = vld [vmem:[%s922_s2] sm:$0xff] (!%p158_p3) }
   0x9   : > { %s933_s18 = smov (%p27_p4, %s931_s18), 0  ;;  %161 = sbr.rel (%p158_p3) target bundleno = 416 (0x1a0), region = 32 }
   0xa   : > { %v212_v1 = vshrl.u32 (!%p158_p3), %v211_v0, 7  ;;  %s759_s26 = smov (!%p158_p3), 127   ;;  %s760_s27 = smov (!%p158_p3), 120   ;;  %458 = vst [vmem:[#allocation2 + $0x12] sm:$0x1] (!%p158_p3), %v764_v42  ;;  %664 = vmatprep.subr.bf16.mxu0 (!%p158_p3), %v765_v44  ;;  %661 = vmatprep.mubr.msk.f32.mxu0 (!%p158_p3), %vm767_vm0, %v764_v42  ;;  %v768_v50 = vmov (!%p158_p3), 0  }
   0xb   : > { %s761_s28 = smov (!%p158_p3), 119   ;;  %s762_s29 = smov (!%p158_p3), 64   ;;  %459 = vst [vmem:[#allocation2 + $0x13] sm:$0x1] (!%p158_p3), %v764_v42  ;;  %460 = vst [vmem:[#allocation2 + $0x14] sm:$0x1] (!%p158_p3), %v764_v42  ;;  %718 = vset.pattern.permute.xlu0 (!%p158_p3), %v768_v50 }
   0xc   : > { %v826_v2 = vsub.s32 (!%p158_p3), 0, %v212_v1  ;;  %v833_v3 = vsub.s32 (!%p158_p3), 4, %v212_v1  ;;  %s763_s30 = smov (!%p158_p3), 63   ;;  %461 = vst [vmem:[#allocation2 + $0x15] sm:$0x1] (!%p158_p3), %v764_v42  ;;  %s766_s4 = smov (!%p158_p3), 56  }
   0xd   : > { %462 = vst [vmem:[#allocation2 + $0x16] sm:$0x1] (!%p158_p3), %v764_v42  ;;  %463 = vst [vmem:[#allocation2 + $0x17] sm:$0x1] (!%p158_p3), %v764_v42  ;;  %s769_s5 = smov (!%p158_p3), 55   ;;  %vm223_vm1 = vcmask (!%p158_p3), 1039360  }
   0xe   : > { %vm262_vm2 = vcmask (!%p158_p3), 982016   ;;  %vm297_vm3 = vcmask (!%p158_p3), 973824   ;;  %vm315_vm4 = vcmask (!%p158_p3), 523264   ;;  %vm350_vm5 = vcmask (!%p158_p3), 515072  }
   0xf   : > { %vm419_vm6 = vcmask (!%p158_p3), 457728   ;;  %vm454_vm7 = vcmask (!%p158_p3), 449536   ;;  %vm474_vm8 = vcmask (!%p158_p3), 195584  }
  0x10   : > { %s935_s13 = smov (!%p188_p5, %s745_s13), 1  ;;  %s937_s12 = smov (!%p190_p6, %s741_s12), 1 }
  0x11   : > { %s644_s19 = sshll.u32 %s935_s13, 2  ;;  %s643_s20 = sshll.u32 %s937_s12, 1 }
  0x12   : > { %s194_s21 = sadd.s32 %s644_s19, %s643_s20  ;;  %s646_s8 = sshll.u32 %s935_s13, 1 }
  0x13   : > { %s645_s22 = sshll.u32 %s194_s21, 2  ;;  %s891_s9 = sadd.s32 %s646_s8, %s937_s12 }
  0x14   : > { %s831_s25 = scalar_lea.vmem %s920_s0, %s645_s22  ;;  %s647_s12 = sshll.u32 %s891_s9, 3 }
  0x15   : > { %v231_v4 = vld [vmem:[%s831_s25 + $0x2] sm:$0x11]  ;;  %v209_v5 = vld [vmem:[%s831_s25] sm:$0x11]  ;;  %v266_v15 = vld [vmem:[%s831_s25 + $0x1] sm:$0x11]  ;;  %s204_s20 = scalar_lea.vmem %s923_s3, %s647_s12 }
  0x16   : > { %v236_v6 = vrot.slane %v231_v4, %v826_v2  ;;  %v214_v7 = vrot.slane %v209_v5, %v826_v2  ;;  %v240_v8 = vrot.slane %v231_v4, %v833_v3  ;;  %v218_v9 = vrot.slane %v209_v5, %v833_v3  ;;  %v248_v10 = vld [vmem:[%s831_s25] sm:$0x11]  ;;  %v227_v12 = vld [vmem:[%s831_s25 + $0x2] sm:$0x3]   ;;  %v319_v24 = vld [vmem:[%s831_s25 + $0x1] sm:$0x11] }
  0x17   : > { %v205_v11 = vld [vmem:[%s831_s25] sm:$0x3]   ;;  %228 = vst [vmem:[#allocation2 + $0x3] sm:$0x3] %v227_v12   ;;  %v257_v13 = vrot.slane %v248_v10, %v833_v3  ;;  %v253_v14 = vrot.slane %v248_v10, %v826_v2  ;;  %v275_v16 = vrot.slane %v266_v15, %v833_v3  ;;  %v271_v17 = vrot.slane %v266_v15, %v826_v2  ;;  %v354_v30 = vld [vmem:[%s831_s25 + $0x2] sm:$0x11] }
  0x18   : > { %241 = vrot.lane.b32.xlu1 %v236_v6, %s759_s26  ;;  %219 = vrot.lane.b32.xlu0 %v214_v7, %s759_s26  ;;  %206 = vst [vmem:[#allocation2] sm:$0x3] %v205_v11   ;;  %v283_v18 = vld [vmem:[%s831_s25] sm:$0x11]  ;;  %v328_v25 = vrot.slane %v319_v24, %v833_v3  ;;  %v324_v26 = vrot.slane %v319_v24, %v826_v2  ;;  %v371_v33 = vld [vmem:[%s831_s25 + $0x3] sm:$0x11] }
  0x19   : > { %v292_v19 = vrot.slane %v283_v18, %v833_v3  ;;  %v288_v20 = vrot.slane %v283_v18, %v826_v2  ;;  %v301_v21 = vld [vmem:[%s831_s25] sm:$0x11]  ;;  %v363_v31 = vrot.slane %v354_v30, %v833_v3  ;;  %v359_v32 = vrot.slane %v354_v30, %v826_v2  ;;  %v388_v36 = vld [vmem:[%s831_s25 + $0x2] sm:$0x11]  ;;  %v423_v43 = vld [vmem:[%s831_s25 + $0x1] sm:$0x11] }
  0x1a   : > { %v310_v22 = vrot.slane %v301_v21, %v833_v3  ;;  %v306_v23 = vrot.slane %v301_v21, %v826_v2  ;;  %v336_v27 = vld [vmem:[%s831_s25] sm:$0x11]  ;;  %v380_v34 = vrot.slane %v371_v33, %v833_v3  ;;  %v376_v35 = vrot.slane %v371_v33, %v826_v2 }
  0x1b   : > { %v345_v28 = vrot.slane %v336_v27, %v833_v3  ;;  %v341_v29 = vrot.slane %v336_v27, %v826_v2  ;;  %v397_v37 = vrot.slane %v388_v36, %v833_v3  ;;  %v393_v38 = vrot.slane %v388_v36, %v826_v2  ;;  %v405_v39 = vld [vmem:[%s831_s25] sm:$0x11] }
  0x1c   : > { %243 = vrot.lane.b32.xlu1 %v240_v8, %s759_s26  ;;  %221 = vrot.lane.b32.xlu0 %v218_v9, %s759_s26  ;;  %v414_v40 = vrot.slane %v405_v39, %v833_v3  ;;  %v410_v41 = vrot.slane %v405_v39, %v826_v2  ;;  %v432_v45 = vrot.slane %v423_v43, %v833_v3  ;;  %v440_v47 = vld [vmem:[%s831_s25] sm:$0x11] }
  0x1d   : > { %v428_v46 = vrot.slane %v423_v43, %v826_v2  ;;  %v449_v48 = vrot.slane %v440_v47, %v833_v3  ;;  %v445_v49 = vrot.slane %v440_v47, %v826_v2  ;;  %v464_v33 = vld [vmem:[%s921_s1] sm:$0xff] }
  0x20   : > { %260 = vrot.lane.b32.xlu1 %v257_v13, %s760_s27  ;;  %258 = vrot.lane.b32.xlu0 %v253_v14, %s760_s27 }
  0x24   : > { %278 = vrot.lane.b32.xlu1 %v275_v16, %s760_s27  ;;  %276 = vrot.lane.b32.xlu0 %v271_v17, %s760_s27 }
  0x28   : > { %295 = vrot.lane.b32.xlu1 %v292_v19, %s761_s28  ;;  %293 = vrot.lane.b32.xlu0 %v288_v20, %s761_s28 }
  0x2c   : > { %313 = vrot.lane.b32.xlu1 %v310_v22, %s762_s29  ;;  %311 = vrot.lane.b32.xlu0 %v306_v23, %s762_s29 }
  0x30   : > { %331 = vrot.lane.b32.xlu1 %v328_v25, %s762_s29  ;;  %329 = vrot.lane.b32.xlu0 %v324_v26, %s762_s29 }
  0x34   : > { %348 = vrot.lane.b32.xlu1 %v345_v28, %s763_s30  ;;  %346 = vrot.lane.b32.xlu0 %v341_v29, %s763_s30 }
  0x38   : > { %366 = vrot.lane.b32.xlu1 %v363_v31, %s762_s29  ;;  %364 = vrot.lane.b32.xlu0 %v359_v32, %s762_s29 }
  0x3c   : > { %383 = vrot.lane.b32.xlu1 %v380_v34, %s762_s29  ;;  %381 = vrot.lane.b32.xlu0 %v376_v35, %s762_s29 }
  0x40   : > { %400 = vrot.lane.b32.xlu1 %v397_v37, %s763_s30  ;;  %398 = vrot.lane.b32.xlu0 %v393_v38, %s763_s30 }
  0x44   : > { %417 = vrot.lane.b32.xlu1 %v414_v40, %s766_s4  ;;  %415 = vrot.lane.b32.xlu0 %v410_v41, %s766_s4 }
  0x48   : > { %435 = vrot.lane.b32.xlu1 %v432_v45, %s766_s4  ;;  %433 = vrot.lane.b32.xlu0 %v428_v46, %s766_s4 }
  0x4c   : > { %452 = vrot.lane.b32.xlu1 %v449_v48, %s769_s5  ;;  %450 = vrot.lane.b32.xlu0 %v445_v49, %s769_s5 }
  0x50   : > { %471 = vperm.xlu0 %718, %v468_v51  }
  0x8a   : > { %v242_v52 = vpop.permute.xlu1 %241  ;;  %v220_v53 = vpop.permute.xlu0 %219 }
  0x8e   : > { %v244_v54 = vpop.permute.xlu1 %243  ;;  %v222_v55 = vpop.permute.xlu0 %221 }
  0x8f   : > { %v245_v56 = vsel %vm223_vm1, %v242_v52, %v244_v54  ;;  %v224_v57 = vsel %vm223_vm1, %v220_v53, %v222_v55 }
  0x90   : > { %247 = vst [vmem:[#allocation2 + $0x5] sm:$0x1] %v245_v56  ;;  %226 = vst [vmem:[#allocation2 + $0x2] sm:$0x1] %v224_v57 }
  0x92   : > { %v261_v58 = vpop.permute.xlu1 %260  ;;  %v259_v59 = vpop.permute.xlu0 %258 }
  0x93   : > { %v263_v60 = vsel %vm262_vm2, %v259_v59, %v261_v58 }
  0x94   : > { %265 = vst [vmem:[#allocation2 + $0x6] sm:$0x1] %v263_v60 }
  0x96   : > { %v279_v61 = vpop.permute.xlu1 %278  ;;  %v277_v62 = vpop.permute.xlu0 %276 }
  0x97   : > { %v280_v63 = vsel %vm262_vm2, %v277_v62, %v279_v61 }
  0x98   : > { %282 = vst [vmem:[#allocation2 + $0x7] sm:$0x1] %v280_v63 }
  0x9a   : > { %v296_v0 = vpop.permute.xlu1 %295  ;;  %v294_v1 = vpop.permute.xlu0 %293 }
  0x9b   : > { %v298_v2 = vsel %vm297_vm3, %v294_v1, %v296_v0 }
  0x9c   : > { %300 = vst [vmem:[#allocation2 + $0x8] sm:$0x1] %v298_v2 }
  0x9e   : > { %v314_v3 = vpop.permute.xlu1 %313  ;;  %v312_v4 = vpop.permute.xlu0 %311 }
  0x9f   : > { %v316_v5 = vsel %vm315_vm4, %v312_v4, %v314_v3  ;;  %v465_v30 = vld [vmem:[#allocation2] sm:$0xff] }
  0xa0   : > { %318 = vst [vmem:[#allocation2 + $0x9] sm:$0x1] %v316_v5 }
  0xa2   : > { %v332_v6 = vpop.permute.xlu1 %331  ;;  %v330_v7 = vpop.permute.xlu0 %329 }
  0xa3   : > { %v333_v8 = vsel %vm315_vm4, %v330_v7, %v332_v6 }
  0xa4   : > { %335 = vst [vmem:[#allocation2 + $0xa] sm:$0x1] %v333_v8 }
  0xa6   : > { %v349_v9 = vpop.permute.xlu1 %348  ;;  %v347_v10 = vpop.permute.xlu0 %346 }
  0xa7   : > { %v351_v11 = vsel %vm350_vm5, %v347_v10, %v349_v9 }
  0xa8   : > { %353 = vst [vmem:[#allocation2 + $0xb] sm:$0x1] %v351_v11 }
  0xaa   : > { %v367_v12 = vpop.permute.xlu1 %366  ;;  %v365_v13 = vpop.permute.xlu0 %364 }
  0xab   : > { %v368_v14 = vsel %vm315_vm4, %v365_v13, %v367_v12 }
  0xac   : > { %370 = vst [vmem:[#allocation2 + $0xc] sm:$0x1] %v368_v14 }
  0xae   : > { %v384_v15 = vpop.permute.xlu1 %383  ;;  %v382_v16 = vpop.permute.xlu0 %381 }
  0xaf   : > { %v385_v17 = vsel %vm315_vm4, %v382_v16, %v384_v15 }
  0xb0   : > { %387 = vst [vmem:[#allocation2 + $0xd] sm:$0x1] %v385_v17 }
  0xb2   : > { %v401_v18 = vpop.permute.xlu1 %400  ;;  %v399_v19 = vpop.permute.xlu0 %398 }
  0xb3   : > { %v402_v20 = vsel %vm350_vm5, %v399_v19, %v401_v18 }
  0xb4   : > { %404 = vst [vmem:[#allocation2 + $0xe] sm:$0x1] %v402_v20 }
  0xb6   : > { %v418_v21 = vpop.permute.xlu1 %417  ;;  %v416_v22 = vpop.permute.xlu0 %415 }
  0xb7   : > { %v420_v23 = vsel %vm419_vm6, %v416_v22, %v418_v21 }
  0xb8   : > { %422 = vst [vmem:[#allocation2 + $0xf] sm:$0x1] %v420_v23 }
  0xba   : > { %v436_v24 = vpop.permute.xlu1 %435  ;;  %v434_v25 = vpop.permute.xlu0 %433 }
  0xbb   : > { %v437_v26 = vsel %vm419_vm6, %v434_v25, %v436_v24 }
  0xbc   : > { %439 = vst [vmem:[#allocation2 + $0x10] sm:$0x1] %v437_v26 }
  0xbe   : > { %v453_v27 = vpop.permute.xlu1 %452  ;;  %v451_v28 = vpop.permute.xlu0 %450 }
  0xbf   : > { %v455_v29 = vsel %vm454_vm7, %v451_v28, %v453_v27  ;;  %v466_v31 = vld [vmem:[#allocation2 + $0x8] sm:$0xff] }
  0xc0   : > { %457 = vst [vmem:[#allocation2 + $0x11] sm:$0x1] %v455_v29  ;;  %v665_v32 = vpack.c.bf16 %v466_v31, %v465_v30 }
  0xc2   : > { %666 = vmatpush3.bf16.msra.mxu0 %v665_v32 }
  0xc3   : > { %659 = vmatprep.subr.mxu0 %v764_v42 }
  0xc7   : > { %v467_v34 = vld [vmem:[#allocation2 + $0x10] sm:$0xff] }
  0xc8   : > { %660 = vmatpush3.msra.mxu0 %v467_v34 }
  0xc9   : > { %662 = vmatmul.mubr.msk.f32.vlgmr.msra.gmra.mrb[0].mxu0 %vm474_vm8, %v464_v33 }
  0xcf   : > { %v472_v35 = vpop.permute.xlu0 %471 }
 0x19c   : > { %v544_v36 = vpop.f32.mrb[0].mxu0 }
 0x19d   : > { %v545_v37 = vadd.f32 %v544_v36, %v472_v35  ;;  %v663_v38 = vpop.f32.mrb[1].mxu0 }
 0x19f   : > { %548 = vst [vmem:[%s204_s20] sm:$0xff] %v545_v37 }
 0x1a0 PF: > { %s13_s16 = sadd.s32 1, %s757_s16   ;;  %s924_s12 = smov %s749_s14 }
 0x1a1   : > { %p10_p7 = scmp.ge.s32.totalorder %s13_s16, 6   ;;  %s925_s13 = smov %s753_s15 }
 0x1a2   : > { %s926_s14 = smov %s929_s17  ;;  %s927_s15 = smov %s933_s18 }
 0x1a3   :  { %12 = sbr.rel (!%p10_p7) target bundleno = 3 (0x3), region = 62 }

</bundles_post_ra>
